<compile_context>
chip_gen: v7x
topology: tpu7x:2x2x1
jax: 0.10.0
libtpu: 0.0.40
codegen_flags: <defaults>
</compile_context>

<pallas_src>
import functools

import jax
import jax.numpy as jnp
from jax.experimental import pallas as pl
from jax.experimental.pallas import tpu as pltpu

_LANE = 128


def _round_up(x, m):
    return (x + m - 1) // m * m


def _activation(name):
    if name == "logistic":
        return jax.nn.sigmoid
    elif name == "tanh":
        return jnp.tanh
    elif name == "relu":
        return lambda x: jnp.maximum(x, 0.0)
    raise ValueError("No such activation function defined")


def _ff_kernel(*refs, n_hidden, activation, compute_dtype):
    if n_hidden > 0:
        x_ref, wi_ref, bi_ref, wh_ref, bh_ref, wo_ref, bo_ref, o_ref = refs
    else:
        x_ref, wi_ref, bi_ref, wo_ref, bo_ref, o_ref = refs
        wh_ref = bh_ref = None
    act = _activation(activation)

    # input_layer: Linear(input -> hidden_padded); bf16 operands, f32 accumulate.
    h = jnp.dot(x_ref[...], wi_ref[...],
                preferred_element_type=jnp.float32) + bi_ref[...]
    # input_drop_out: identity (eval mode).
    # TODO(synk): training-mode dropout (pltpu.prng_random_bits mask) not implemented.

    # hidden_layer_l: Linear + activation (+ dropout = identity).
    # n_hidden is small here so a static unroll is fine; for deep stacks switch to
    # lax.fori_loop (wh_ref[l] dynamic indexing works) or a trailing layer grid axis.
    for l in range(n_hidden):
        h = jnp.dot(h.astype(compute_dtype), wh_ref[l],
                    preferred_element_type=jnp.float32) + bh_ref[l]
        h = act(h)

    # output_layer: Linear(hidden -> 128-lane padded; real output is column 0) + Sigmoid.
    out = jnp.dot(h.astype(compute_dtype), wo_ref[...],
                  preferred_element_type=jnp.float32) + bo_ref[...]
    o_ref[...] = jax.nn.sigmoid(out)


def feedforward_nn(x, params, activation="logistic", *,
                   compute_dtype=jnp.bfloat16, batch_tile=512):
    """Runs the whole MLP in one Pallas kernel, batch-tiled over a parallel grid."""
    w_in, b_in, w_hid, b_hid, w_out, b_out = params
    B, In = x.shape
    H = w_in.shape[1]
    n_hidden = w_hid.shape[0]

    Hp = _round_up(H, _LANE)   # lane-dense hidden width
    Op = _LANE                 # lane-dense output width (only column 0 is real)
    cd = compute_dtype
    cd_bytes = jnp.dtype(cd).itemsize

    # --- pad weights/biases to lane-dense shapes (zeros feed zeros forward; padded
    #     rows of the *next* layer's weights are zero, so stray act(0) values in the
    #     padded lanes never contribute to real outputs). Biases stay f32. ---
    wi = jnp.zeros((In, Hp), cd).at[:, :H].set(w_in.astype(cd))
    bi = jnp.zeros((1, Hp), jnp.float32).at[:, :H].set(b_in.astype(jnp.float32))
    wo = jnp.zeros((Hp, Op), cd).at[:H, :1].set(w_out.astype(cd))
    bo = jnp.zeros((1, Op), jnp.float32).at[:, :1].set(b_out.astype(jnp.float32))
    if n_hidden > 0:
        wh = jnp.zeros((n_hidden, Hp, Hp), cd).at[:, :H, :H].set(w_hid.astype(cd))
        bh = jnp.zeros((n_hidden, 1, Hp), jnp.float32).at[:, :, :H].set(
            b_hid.astype(jnp.float32))

    # --- batch tiling: pad batch so every grid step is a full tile. ---
    TB = batch_tile if B >= batch_tile else max(8, _round_up(B, 8))
    Bp = _round_up(B, TB)
    xp = jnp.zeros((Bp, In), cd).at[:B].set(x.astype(cd))
    grid = (Bp // TB,)

    # --- specs: x/out streamed per tile, weights resident (invariant index_map). ---
    in_specs = [
        pl.BlockSpec((TB, In), lambda i: (i, 0)),          # x tile
        pl.BlockSpec((In, Hp), lambda i: (0, 0)),          # w_in (resident)
        pl.BlockSpec((1, Hp), lambda i: (0, 0)),           # b_in
    ]
    args = [xp, wi, bi]
    if n_hidden > 0:
        in_specs += [
            pl.BlockSpec((n_hidden, Hp, Hp), lambda i: (0, 0, 0)),  # w_hid stack
            pl.BlockSpec((n_hidden, 1, Hp), lambda i: (0, 0, 0)),   # b_hid stack
        ]
        args += [wh, bh]
    in_specs += [
        pl.BlockSpec((Hp, Op), lambda i: (0, 0)),          # w_out
        pl.BlockSpec((1, Op), lambda i: (0, 0)),           # b_out
    ]
    args += [wo, bo]
    out_spec = pl.BlockSpec((TB, Op), lambda i: (i, 0))

    # --- VMEM budget: resident weights + double-buffered streamed tiles + live h. ---
    # TODO(synk): if n_hidden*Hp*Hp no longer fits (v7x has 64 MiB), stream layers over
    # a trailing "arbitrary" grid axis with h carried in a VMEM scratch accumulator.
    weight_bytes = (In * Hp + n_hidden * Hp * Hp + Hp * Op) * cd_bytes \
        + (Hp + n_hidden * Hp + Op) * 4
    stream_bytes = TB * In * cd_bytes + TB * Op * 4
    interm_bytes = 3 * TB * Hp * 4
    vmem_needed = 2 * (weight_bytes + stream_bytes) + interm_bytes
    vmem_limit = int(min(max(2 * vmem_needed, 32 * 2**20), 48 * 2**20))

    kernel = functools.partial(_ff_kernel, n_hidden=n_hidden,
                               activation=activation, compute_dtype=cd)

    out = pl.pallas_call(
        kernel,
        out_shape=jax.ShapeDtypeStruct((Bp, Op), jnp.float32),
        grid=grid,
        in_specs=in_specs,
        out_specs=out_spec,
        compiler_params=pltpu.CompilerParams(
            dimension_semantics=("parallel",),
            vmem_limit_bytes=vmem_limit),
    )(*args)
    return out[:B, :1]


def init_params(key, input_size, num_hidden_layers, hidden_size):
    """PyTorch-Linear-style init: U(-1/sqrt(fan_in), 1/sqrt(fan_in)).

    Weights are stored already transposed to [in, out] for the kernel.
    """
    def linear(key, fan_in, fan_out):
        kw, kb = jax.random.split(key)
        bound = 1.0 / jnp.sqrt(fan_in)
        w = jax.random.uniform(kw, (fan_in, fan_out), jnp.float32, -bound, bound)
        b = jax.random.uniform(kb, (1, fan_out), jnp.float32, -bound, bound)
        return w, b

    n_hidden = num_hidden_layers - 1
    keys = jax.random.split(key, 2 + max(n_hidden, 1))
    w_in, b_in = linear(keys[0], input_size, hidden_size)

    wh_list, bh_list = [], []
    for l in range(n_hidden):
        w, b = linear(keys[1 + l], hidden_size, hidden_size)
        wh_list.append(w)
        bh_list.append(b)
    if n_hidden > 0:
        w_hid = jnp.stack(wh_list)                    # [n_hidden, H, H]
        b_hid = jnp.stack(bh_list)                    # [n_hidden, 1, H]
    else:
        w_hid = jnp.zeros((0, hidden_size, hidden_size), jnp.float32)
        b_hid = jnp.zeros((0, 1, hidden_size), jnp.float32)

    w_out, b_out = linear(keys[-1], hidden_size, 1)   # [H, 1], [1, 1]
    return w_in, b_in, w_hid, b_hid, w_out, b_out


def reference_forward(x, params, activation="logistic", compute_dtype=jnp.bfloat16):
    """Pure-JAX reference matching the PyTorch Sequential (eval mode), using the same
    bf16-operand / f32-accumulate scheme as the kernel."""
    w_in, b_in, w_hid, b_hid, w_out, b_out = params
    act = _activation(activation)
    cd = compute_dtype
    dot = lambda a, b: jnp.dot(a.astype(cd), b.astype(cd),
                               preferred_element_type=jnp.float32)
    h = dot(x, w_in) + b_in
    for l in range(w_hid.shape[0]):
        h = act(dot(h, w_hid[l]) + b_hid[l])
    return jax.nn.sigmoid(dot(h, w_out) + b_out)


if __name__ == "__main__":
    key = jax.random.PRNGKey(0)
    k_x, k_p = jax.random.split(key)

    batch = 8
    input_size = 16
    num_hidden_layers = 3
    hidden_size = 32
    activation = "logistic"

    x = jax.random.normal(k_x, (batch, input_size), jnp.float32)
    params = init_params(k_p, input_size, num_hidden_layers, hidden_size)

    out = feedforward_nn(x, params, activation=activation)
    out = jax.block_until_ready(out)

    ref = reference_forward(x, params, activation=activation)
    assert out.shape == (batch, 1), out.shape
    assert jnp.allclose(out, ref, atol=1e-4, rtol=1e-4), (
        f"max err {jnp.max(jnp.abs(out - ref))}")

    # Also exercise the no-hidden-layer path (num_hidden_layers == 1) once.
    params1 = init_params(k_p, input_size, 1, hidden_size)
    out1 = jax.block_until_ready(feedforward_nn(x, params1, activation=activation))
    ref1 = reference_forward(x, params1, activation=activation)
    assert jnp.allclose(out1, ref1, atol=1e-4, rtol=1e-4), (
        f"max err {jnp.max(jnp.abs(out1 - ref1))}")

    print("KERNEL_OK")
</pallas_src>

<mosaic_0001>
module attributes {stable_mosaic.version = 11 : i64} {
  func.func @_ff_kernel(%arg0: i32, %arg1: memref<8x16xbf16, #tpu.memory_space<vmem>>, %arg2: memref<16x128xbf16, #tpu.memory_space<vmem>>, %arg3: memref<1x128xf32, #tpu.memory_space<vmem>>, %arg4: memref<2x128x128xbf16, #tpu.memory_space<vmem>>, %arg5: memref<2x1x128xf32, #tpu.memory_space<vmem>>, %arg6: memref<128x128xbf16, #tpu.memory_space<vmem>>, %arg7: memref<1x128xf32, #tpu.memory_space<vmem>>, %arg8: memref<8x128xf32, #tpu.memory_space<vmem>>) attributes {dimension_semantics = [#tpu.dimension_semantics<parallel>], iteration_bounds = array<i64: 1>, scalar_prefetch = 0 : i64, scratch_operands = 0 : i64, tpu.core_type = #tpu.core_type<tc>, window_params = [{transform_indices = @transform_0, window_bounds = array<i64: 8, 16>}, {pipeline_mode = #tpu.pipeline_mode<synchronous>, transform_indices = @transform_1, window_bounds = array<i64: 16, 128>}, {pipeline_mode = #tpu.pipeline_mode<synchronous>, transform_indices = @transform_2, window_bounds = array<i64: 1, 128>}, {pipeline_mode = #tpu.pipeline_mode<synchronous>, transform_indices = @transform_3, window_bounds = array<i64: 2, 128, 128>}, {pipeline_mode = #tpu.pipeline_mode<synchronous>, transform_indices = @transform_4, window_bounds = array<i64: 2, 1, 128>}, {pipeline_mode = #tpu.pipeline_mode<synchronous>, transform_indices = @transform_5, window_bounds = array<i64: 128, 128>}, {pipeline_mode = #tpu.pipeline_mode<synchronous>, transform_indices = @transform_6, window_bounds = array<i64: 1, 128>}, {transform_indices = @transform_7, window_bounds = array<i64: 8, 128>}]} {
    %c0 = arith.constant 0 : index
    %c0_0 = arith.constant 0 : index
    %0 = vector.load %arg1[%c0, %c0_0] : memref<8x16xbf16, #tpu.memory_space<vmem>>, vector<8x16xbf16>
    %c0_1 = arith.constant 0 : index
    %c0_2 = arith.constant 0 : index
    %1 = vector.load %arg2[%c0_1, %c0_2] : memref<16x128xbf16, #tpu.memory_space<vmem>>, vector<16x128xbf16>
    %cst = arith.constant dense<0.000000e+00> : vector<8x128xf32>
    %2 = tpu.matmul %0, %1, %cst {dimension_numbers = #tpu.dot_dimension_numbers<[1], [0], [0], [1], [0, 0, 1, 1], [], []>} : vector<8x16xbf16>, vector<16x128xbf16>, vector<8x128xf32> -> vector<8x128xf32>
    %c0_3 = arith.constant 0 : index
    %c0_4 = arith.constant 0 : index
    %3 = vector.load %arg3[%c0_3, %c0_4] : memref<1x128xf32, #tpu.memory_space<vmem>>, vector<1x128xf32>
    %4 = vector.broadcast %3 : vector<1x128xf32> to vector<8x128xf32>
    %5 = arith.addf %2, %4 : vector<8x128xf32>
    %6 = arith.truncf %5 : vector<8x128xf32> to vector<8x128xbf16>
    %c0_5 = arith.constant 0 : index
    %c0_6 = arith.constant 0 : index
    %c0_7 = arith.constant 0 : index
    %7 = vector.load %arg4[%c0_5, %c0_6, %c0_7] : memref<2x128x128xbf16, #tpu.memory_space<vmem>>, vector<1x128x128xbf16>
    %8 = vector.shape_cast %7 : vector<1x128x128xbf16> to vector<128x128xbf16>
    %cst_8 = arith.constant dense<0.000000e+00> : vector<8x128xf32>
    %9 = tpu.matmul %6, %8, %cst_8 {dimension_numbers = #tpu.dot_dimension_numbers<[1], [0], [0], [1], [0, 0, 1, 1], [], []>} : vector<8x128xbf16>, vector<128x128xbf16>, vector<8x128xf32> -> vector<8x128xf32>
    %c0_9 = arith.constant 0 : index
    %c0_10 = arith.constant 0 : index
    %c0_11 = arith.constant 0 : index
    %10 = vector.load %arg5[%c0_9, %c0_10, %c0_11] : memref<2x1x128xf32, #tpu.memory_space<vmem>>, vector<1x1x128xf32>
    %11 = vector.shape_cast %10 : vector<1x1x128xf32> to vector<1x128xf32>
    %12 = vector.broadcast %11 : vector<1x128xf32> to vector<8x128xf32>
    %13 = arith.addf %9, %12 : vector<8x128xf32>
    %14 = arith.negf %13 : vector<8x128xf32>
    %15 = math.exp %14 : vector<8x128xf32>
    %cst_12 = arith.constant 1.000000e+00 : f32
    %16 = vector.broadcast %cst_12 : f32 to vector<8x128xf32>
    %17 = arith.addf %16, %15 : vector<8x128xf32>
    %18 = arith.divf %16, %17 : vector<8x128xf32>
    %19 = arith.truncf %18 : vector<8x128xf32> to vector<8x128xbf16>
    %c1 = arith.constant 1 : index
    %c0_13 = arith.constant 0 : index
    %c0_14 = arith.constant 0 : index
    %20 = vector.load %arg4[%c1, %c0_13, %c0_14] : memref<2x128x128xbf16, #tpu.memory_space<vmem>>, vector<1x128x128xbf16>
    %21 = vector.shape_cast %20 : vector<1x128x128xbf16> to vector<128x128xbf16>
    %cst_15 = arith.constant dense<0.000000e+00> : vector<8x128xf32>
    %22 = tpu.matmul %19, %21, %cst_15 {dimension_numbers = #tpu.dot_dimension_numbers<[1], [0], [0], [1], [0, 0, 1, 1], [], []>} : vector<8x128xbf16>, vector<128x128xbf16>, vector<8x128xf32> -> vector<8x128xf32>
    %c1_16 = arith.constant 1 : index
    %c0_17 = arith.constant 0 : index
    %c0_18 = arith.constant 0 : index
    %23 = vector.load %arg5[%c1_16, %c0_17, %c0_18] : memref<2x1x128xf32, #tpu.memory_space<vmem>>, vector<1x1x128xf32>
    %24 = vector.shape_cast %23 : vector<1x1x128xf32> to vector<1x128xf32>
    %25 = vector.broadcast %24 : vector<1x128xf32> to vector<8x128xf32>
    %26 = arith.addf %22, %25 : vector<8x128xf32>
    %27 = arith.negf %26 : vector<8x128xf32>
    %28 = math.exp %27 : vector<8x128xf32>
    %cst_19 = arith.constant 1.000000e+00 : f32
    %29 = vector.broadcast %cst_19 : f32 to vector<8x128xf32>
    %30 = arith.addf %29, %28 : vector<8x128xf32>
    %31 = arith.divf %29, %30 : vector<8x128xf32>
    %32 = arith.truncf %31 : vector<8x128xf32> to vector<8x128xbf16>
    %c0_20 = arith.constant 0 : index
    %c0_21 = arith.constant 0 : index
    %33 = vector.load %arg6[%c0_20, %c0_21] : memref<128x128xbf16, #tpu.memory_space<vmem>>, vector<128x128xbf16>
    %cst_22 = arith.constant dense<0.000000e+00> : vector<8x128xf32>
    %34 = tpu.matmul %32, %33, %cst_22 {dimension_numbers = #tpu.dot_dimension_numbers<[1], [0], [0], [1], [0, 0, 1, 1], [], []>} : vector<8x128xbf16>, vector<128x128xbf16>, vector<8x128xf32> -> vector<8x128xf32>
    %c0_23 = arith.constant 0 : index
    %c0_24 = arith.constant 0 : index
    %35 = vector.load %arg7[%c0_23, %c0_24] : memref<1x128xf32, #tpu.memory_space<vmem>>, vector<1x128xf32>
    %36 = vector.broadcast %35 : vector<1x128xf32> to vector<8x128xf32>
    %37 = arith.addf %34, %36 : vector<8x128xf32>
    %38 = arith.negf %37 : vector<8x128xf32>
    %39 = math.exp %38 : vector<8x128xf32>
    %cst_25 = arith.constant 1.000000e+00 : f32
    %40 = vector.broadcast %cst_25 : f32 to vector<8x128xf32>
    %41 = arith.addf %40, %39 : vector<8x128xf32>
    %42 = arith.divf %40, %41 : vector<8x128xf32>
    %c0_26 = arith.constant 0 : index
    %c0_27 = arith.constant 0 : index
    %43 = vector.load %arg8[%c0_26, %c0_27] : memref<8x128xf32, #tpu.memory_space<vmem>>, vector<8x128xf32>
    tpu.vector_store %arg8[%c0_26, %c0_27], %42 {strides = array<i32>} : memref<8x128xf32, #tpu.memory_space<vmem>>, vector<8x128xf32>,
    return
  }
  func.func @transform_0(%arg0: i32) -> (i32, i32) {
    %c0_i32 = arith.constant 0 : i32
    %c0_i32_0 = arith.constant 0 : i32
    return %arg0, %c0_i32 : i32, i32
  }
  func.func @transform_1(%arg0: i32) -> (i32, i32) {
    %c0_i32 = arith.constant 0 : i32
    %c0_i32_0 = arith.constant 0 : i32
    %c0_i32_1 = arith.constant 0 : i32
    return %c0_i32, %c0_i32_0 : i32, i32
  }
  func.func @transform_2(%arg0: i32) -> (i32, i32) {
    %c0_i32 = arith.constant 0 : i32
    %c0_i32_0 = arith.constant 0 : i32
    %c0_i32_1 = arith.constant 0 : i32
    return %c0_i32, %c0_i32_0 : i32, i32
  }
  func.func @transform_3(%arg0: i32) -> (i32, i32, i32) {
    %c0_i32 = arith.constant 0 : i32
    %c0_i32_0 = arith.constant 0 : i32
    %c0_i32_1 = arith.constant 0 : i32
    %c0_i32_2 = arith.constant 0 : i32
    return %c0_i32, %c0_i32_0, %c0_i32_1 : i32, i32, i32
  }
  func.func @transform_4(%arg0: i32) -> (i32, i32, i32) {
    %c0_i32 = arith.constant 0 : i32
    %c0_i32_0 = arith.constant 0 : i32
    %c0_i32_1 = arith.constant 0 : i32
    %c0_i32_2 = arith.constant 0 : i32
    return %c0_i32, %c0_i32_0, %c0_i32_1 : i32, i32, i32
  }
  func.func @transform_5(%arg0: i32) -> (i32, i32) {
    %c0_i32 = arith.constant 0 : i32
    %c0_i32_0 = arith.constant 0 : i32
    %c0_i32_1 = arith.constant 0 : i32
    return %c0_i32, %c0_i32_0 : i32, i32
  }
  func.func @transform_6(%arg0: i32) -> (i32, i32) {
    %c0_i32 = arith.constant 0 : i32
    %c0_i32_0 = arith.constant 0 : i32
    %c0_i32_1 = arith.constant 0 : i32
    return %c0_i32, %c0_i32_0 : i32, i32
  }
  func.func @transform_7(%arg0: i32) -> (i32, i32) {
    %c0_i32 = arith.constant 0 : i32
    %c0_i32_0 = arith.constant 0 : i32
    return %arg0, %c0_i32 : i32, i32
  }
}

</mosaic_0001>

<bundles_post_ra>
// kernel: tpu_custom_call.1
= control target key start
LH: loop header
LB: loop body
LE: loop exit
PB: predicated region body
PF: predicated region fallthrough
CT: control target
= control target key end

     0   :  { %12 = vsyncpa [#allocation3], 0  ;;  %s971_s0 = inlined_call_operand.hbm [shape: bf16[8,16], index: 0, kind: input, shape index: {}]   ;;  %s972_s1 = inlined_call_operand.hbm [shape: bf16[16,128], index: 1, kind: input, shape index: {}]   ;;  %s973_s2 = inlined_call_operand.vmem [shape: f32[1,128], index: 2, kind: input, shape index: {}]   ;;  %s974_s3 = inlined_call_operand.hbm [shape: bf16[2,128,128], index: 3, kind: input, shape index: {}]   ;;  %s975_s4 = inlined_call_operand.vmem [shape: f32[2,1,128], index: 4, kind: input, shape index: {}]   ;;  %s976_s5 = inlined_call_operand.hbm [shape: bf16[128,128], index: 5, kind: input, shape index: {}]   ;;  %s977_s6 = inlined_call_operand.vmem [shape: f32[1,128], index: 6, kind: input, shape index: {}]   ;;  %s978_s7 = inlined_call_operand.hbm [shape: f32[8,128], index: 7, kind: output, shape index: {}]  }
   0x1   :  { %13 = vsyncpa [#allocation6], 0 }
   0x2   :  { %14 = vsyncpa [#allocation9], 0 }
   0x3   :  { %15 = vsyncpa [#allocation4], 0  ;;  %s808_s24 = smov [#allocation5]   ;;  %s690_s28 = scalar_lea.hbm %s972_s1, 128 }
   0x4   :  { %s31_s25 = sshll.u32 %s808_s24, 4  ;;  %p691_p0 = scmp.ne.s32.totalorder %s972_s1, %s690_s28  ;;  %s32_s25 = int_to_ptr.vmem [resolvable:$true] %s31_s25 }
   0x5   :  { %p694_p1 = scmp.lt.u32.totalorder %s690_s28, %s972_s1 }
   0x7   :  { %p696_p2 = pnand %p694_p1, %p691_p0 }
   0x9   :  { %699 = shalt.err (!%p696_p2)
}
   0xa   :  { %s700_s10 = scalar_lea.vmem %s32_s25, 128  ;;  %p705_p4 = scmp.lt.s32.totalorder %s32_s25, %s32_s25 }
   0xb   :  { %p701_p3 = scmp.ne.s32.totalorder %s32_s25, %s700_s10  ;;  %p706_p5 = scmp.lt.s32.totalorder %s700_s10, %s700_s10 }
   0xd   :  { %p707_p6 = por %p706_p5, %p705_p4 }
   0xf   :  { %p708_p7 = pnand %p707_p6, %p701_p3 }
  0x11   :  { %711 = shalt.err (!%p708_p7)
}
  0x12   :  { %s809_s11 = smov 64   ;;  %s810_s12 = smov 4  }
  0x13   :  { %37 = dma.hbm_to_vmem [thread:$0]  %s972_s1, 128, %s32_s25, [#allocation6], %s809_s11, %s809_s11, %s810_s12  }
  0x14   :  { %s811_s15 = smov [#allocation2]   ;;  %s812_s17 = smov [#allocation7]  }
  0x15   :  { %s22_s16 = sshll.u32 %s811_s15, 4  ;;  %s45_s18 = sshll.u32 %s812_s17, 4  ;;  %s23_s16 = int_to_ptr.vmem [resolvable:$true] %s22_s16  ;;  %s46_s18 = int_to_ptr.vmem [resolvable:$true] %s45_s18 }
  0x16   :  { %s712_s21 = scalar_lea.hbm %s971_s0, 64 }
  0x17   :  { %p713_p8 = scmp.ne.s32.totalorder %s971_s0, %s712_s21  ;;  %p716_p9 = scmp.lt.u32.totalorder %s712_s21, %s971_s0 }
  0x19   :  { %p718_p10 = pnand %p716_p9, %p713_p8 }
  0x1b   :  { %721 = shalt.err (!%p718_p10)
}
  0x1c   :  { %s722_s1 = scalar_lea.vmem %s23_s16, 64  ;;  %p727_p12 = scmp.lt.s32.totalorder %s23_s16, %s23_s16 }
  0x1d   :  { %p723_p11 = scmp.ne.s32.totalorder %s23_s16, %s722_s1  ;;  %p728_p13 = scmp.lt.s32.totalorder %s722_s1, %s722_s1 }
  0x1f   :  { %p729_p0 = por %p728_p13, %p727_p12 }
  0x21   :  { %p730_p1 = pnand %p729_p0, %p723_p11 }
  0x23   :  { %733 = shalt.err (!%p730_p1)
}
  0x24   :  { %25 = dma.hbm_to_vmem [thread:$0]  %s971_s0, 64, %s23_s16, [#allocation3]  }
  0x25   :  { %s734_s30 = scalar_lea.hbm %s974_s3, 2048 }
  0x26   :  { %p735_p2 = scmp.ne.s32.totalorder %s974_s3, %s734_s30  ;;  %p738_p3 = scmp.lt.u32.totalorder %s734_s30, %s974_s3 }
  0x28   :  { %p740_p4 = pnand %p738_p3, %p735_p2 }
  0x2a   :  { %743 = shalt.err (!%p740_p4)
}
  0x2b   :  { %s744_s14 = scalar_lea.vmem %s46_s18, 2048  ;;  %p749_p6 = scmp.lt.s32.totalorder %s46_s18, %s46_s18 }
  0x2c   :  { %p745_p5 = scmp.ne.s32.totalorder %s46_s18, %s744_s14  ;;  %p750_p7 = scmp.lt.s32.totalorder %s744_s14, %s744_s14 }
  0x2e   :  { %p751_p8 = por %p750_p7, %p749_p6 }
  0x30   :  { %p752_p9 = pnand %p751_p8, %p745_p5 }
  0x32   :  { %755 = shalt.err (!%p752_p9)
}
  0x33   :  { %51 = dma.hbm_to_vmem [thread:$0]  %s974_s3, 2048, %s46_s18, [#allocation6], %s809_s11, %s809_s11, %s810_s12  }
  0x34   :  { %s813_s16 = smov [#allocation8]   ;;  %s756_s21 = scalar_lea.hbm %s976_s5, 1024 }
  0x35   :  { %s59_s17 = sshll.u32 %s813_s16, 4  ;;  %p757_p10 = scmp.ne.s32.totalorder %s976_s5, %s756_s21  ;;  %s60_s17 = int_to_ptr.vmem [resolvable:$true] %s59_s17 }
  0x36   :  { %p760_p11 = scmp.lt.u32.totalorder %s756_s21, %s976_s5 }
  0x38   :  { %p762_p12 = pnand %p760_p11, %p757_p10 }
  0x3a   :  { %765 = shalt.err (!%p762_p12)
}
  0x3b   :  { %s766_s1 = scalar_lea.vmem %s60_s17, 1024  ;;  %p771_p0 = scmp.lt.s32.totalorder %s60_s17, %s60_s17 }
  0x3c   :  { %p767_p13 = scmp.ne.s32.totalorder %s60_s17, %s766_s1  ;;  %p772_p1 = scmp.lt.s32.totalorder %s766_s1, %s766_s1 }
  0x3e   :  { %p773_p2 = por %p772_p1, %p771_p0 }
  0x40   :  { %p774_p3 = pnand %p773_p2, %p767_p13 }
  0x42   :  { %777 = shalt.err (!%p774_p3)
}
  0x43   :  { %65 = dma.hbm_to_vmem [thread:$0]  %s976_s5, 1024, %s60_s17, [#allocation9], %s809_s11, %s809_s11, %s810_s12  }
  0x44   :  { %800 = dma.done.wait [#allocation3], 64  }
  0x45   :  { %801 = vsyncadd [#allocation3], 4294967232 }
  0x46   :  { %802 = dma.done.wait [#allocation6], 2176  }
  0x47   :  { %803 = vsyncadd [#allocation6], 4294965120 }
  0x48   :  { %804 = dma.done.wait [#allocation9], 1024  }
  0x49   :  { %805 = vsyncadd [#allocation9], 4294966272  ;;  %v814_v0 = vmov 0.0   ;;  %vm815_vm0 = vmmov 0   ;;  %v653_v1 = vld [vmem:[#allocation5] sm:$0xff]   ;;  %vm97_vm1 = vcmask 130048  }
  0x4a   :  { %578 = vmatprep.subr.bf16.mxu0 %v814_v0  ;;  %580 = vmatprep.mubr.msk.bf16.mxu0 %vm815_vm0, %v814_v0  ;;  %v81_v2 = vld [vmem:[#allocation2] sm:$0xf]  ;;  %v654_v3 = vld [vmem:[#allocation7] sm:$0xff]   ;;  %v655_v4 = vld [vmem:[#allocation7 + $0x8] sm:$0xff]  }
  0x4b   :  { %584 = vmatprep.subr.bf16.mxu1 %v814_v0  ;;  %600 = vmatprep.mubr.msk.bf16.mxu1 %vm815_vm0, %v814_v0  ;;  %v656_v5 = vld [vmem:[#allocation7 + $0x10] sm:$0xff]   ;;  %v657_v6 = vld [vmem:[#allocation7 + $0x18] sm:$0xff]   ;;  %v658_v7 = vld [vmem:[#allocation7 + $0x20] sm:$0xff]  }
  0x4c   :  { %579 = vmatpush3.bf16.msra.mxu0 %v653_v1  ;;  %585 = vmatpush3.bf16.msra.mxu1 %v654_v3  ;;  %v659_v8 = vld [vmem:[#allocation7 + $0x28] sm:$0xff]   ;;  %v660_v9 = vld [vmem:[#allocation7 + $0x30] sm:$0xff]   ;;  %v661_v10 = vld [vmem:[#allocation7 + $0x38] sm:$0xff]  }
  0x4d   :  { %604 = vmatprep.subr.bf16.mxu0 %v814_v0  ;;  %586 = vmatprep.subr.bf16.mxu1 %v814_v0  ;;  %v515_v11 = vld [vmem:[%s973_s2] ss:$0 sm:$0xff]  ;;  %v662_v18 = vld [vmem:[#allocation7 + $0x40] sm:$0xff]   ;;  %v663_v19 = vld [vmem:[#allocation7 + $0x48] sm:$0xff]  }
  0x4e   :  { %v664_v20 = vld [vmem:[#allocation7 + $0x50] sm:$0xff]   ;;  %v665_v21 = vld [vmem:[#allocation7 + $0x58] sm:$0xff]   ;;  %v666_v22 = vld [vmem:[#allocation7 + $0x60] sm:$0xff]  }
  0x4f   :  { %581 = vmatmul.mubr.msk.bf16.vlgmr.msra.gmra.mrb[0].mxu0 %vm97_vm1, %v81_v2  ;;  %v667_v23 = vld [vmem:[#allocation7 + $0x68] sm:$0xff]   ;;  %v668_v24 = vld [vmem:[#allocation7 + $0x70] sm:$0xff]   ;;  %v669_v25 = vld [vmem:[#allocation7 + $0x78] sm:$0xff]  }
  0x50   :  { %620 = vmatprep.mubr.msk.bf16.mxu0 %vm815_vm0, %v814_v0  ;;  %587 = vmatpush3.bf16.msra.mxu1 %v655_v4  ;;  %v518_v26 = vld [vmem:[%s975_s4] ss:$0 sm:$0xff]  ;;  %v670_v37 = vld [vmem:[#allocation8] sm:$0xff]   ;;  %v671_v38 = vld [vmem:[#allocation8 + $0x8] sm:$0xff]  }
  0x51   :  { %588 = vmatprep.subr.bf16.mxu1 %v814_v0  ;;  %605 = vmatpush3.bf16.msra.mxu0 %v662_v18  ;;  %v672_v39 = vld [vmem:[#allocation8 + $0x10] sm:$0xff]   ;;  %v673_v40 = vld [vmem:[#allocation8 + $0x18] sm:$0xff]   ;;  %v674_v41 = vld [vmem:[#allocation8 + $0x20] sm:$0xff]  }
  0x52   :  { %606 = vmatprep.subr.bf16.mxu0 %v814_v0  ;;  %v675_v42 = vld [vmem:[#allocation8 + $0x28] sm:$0xff]   ;;  %v676_v43 = vld [vmem:[#allocation8 + $0x30] sm:$0xff]   ;;  %v677_v44 = vld [vmem:[#allocation8 + $0x38] sm:$0xff]  }
  0x53   :  { %v529_v45 = vld [vmem:[%s975_s4 + $0x1] ss:$0 sm:$0xff]  ;;  %v539_v56 = vld [vmem:[%s977_s6] ss:$0 sm:$0xff]  ;;  %s816_s4 = smov [#allocation10]  }
  0x54   :  { %589 = vmatpush3.bf16.msra.mxu1 %v656_v5  ;;  %s504_s30 = sshll.u32 %s816_s4, 4  ;;  %s505_s30 = int_to_ptr.vmem [resolvable:$true] %s504_s30 }
  0x55   :  { %590 = vmatprep.subr.bf16.mxu1 %v814_v0  ;;  %607 = vmatpush3.bf16.msra.mxu0 %v663_v19  ;;  %s778_s8 = scalar_lea.vmem %s505_s30, 128  ;;  %p783_p5 = scmp.lt.s32.totalorder %s505_s30, %s505_s30 }
  0x56   :  { %608 = vmatprep.subr.bf16.mxu0 %v814_v0  ;;  %p779_p4 = scmp.ne.s32.totalorder %s505_s30, %s778_s8  ;;  %p784_p6 = scmp.lt.s32.totalorder %s778_s8, %s778_s8 }
  0x58   :  { %591 = vmatpush3.bf16.msra.mxu1 %v657_v6  ;;  %p785_p7 = por %p784_p6, %p783_p5 }
  0x59   :  { %592 = vmatprep.subr.bf16.mxu1 %v814_v0  ;;  %609 = vmatpush3.bf16.msra.mxu0 %v664_v20 }
  0x5a   :  { %610 = vmatprep.subr.bf16.mxu0 %v814_v0  ;;  %p786_p8 = pnand %p785_p7, %p779_p4 }
  0x5c   :  { %593 = vmatpush3.bf16.msra.mxu1 %v658_v7 }
  0x5d   :  { %594 = vmatprep.subr.bf16.mxu1 %v814_v0  ;;  %611 = vmatpush3.bf16.msra.mxu0 %v665_v21 }
  0x5e   :  { %612 = vmatprep.subr.bf16.mxu0 %v814_v0 }
  0x60   :  { %595 = vmatpush3.bf16.msra.mxu1 %v659_v8 }
  0x61   :  { %596 = vmatprep.subr.bf16.mxu1 %v814_v0  ;;  %613 = vmatpush3.bf16.msra.mxu0 %v666_v22 }
  0x62   :  { %614 = vmatprep.subr.bf16.mxu0 %v814_v0 }
  0x64   :  { %597 = vmatpush3.bf16.msra.mxu1 %v660_v9 }
  0x65   :  { %598 = vmatprep.subr.bf16.mxu1 %v814_v0  ;;  %615 = vmatpush3.bf16.msra.mxu0 %v667_v23 }
  0x66   :  { %616 = vmatprep.subr.bf16.mxu0 %v814_v0 }
  0x68   :  { %599 = vmatpush3.bf16.msra.mxu1 %v661_v10 }
  0x69   :  { %624 = vmatprep.subr.bf16.mxu1 %v814_v0  ;;  %617 = vmatpush3.bf16.msra.mxu0 %v668_v24 }
  0x6a   :  { %618 = vmatprep.subr.bf16.mxu0 %v814_v0 }
  0x6d   :  { %619 = vmatpush3.bf16.msra.mxu0 %v669_v25 }
 0x122   :  { %v135_v12 = vpop.f32.mrb[0].mxu0 }
 0x123   :  { %v136_v13 = vadd.f32 %v515_v11, %v135_v12  ;;  %v582_v14 = vpop.f32.mrb[1].mxu0 }
 0x124   :  { %v138_v15 = vpop.f32.mrb[2].mxu0 }
 0x125   :  { %v141_v16 = vpack.c.bf16 %v136_v13, %v136_v13  ;;  %v583_v17 = vpop.f32.mrb[3].mxu0 }
 0x127   :  { %601 = vmatmul.mubr.bf16.vlgmr.msra.gmra.mrb[0].mxu1 %v141_v16 }
 0x128   :  { %640 = vmatprep.mubr.msk.bf16.mxu1 %vm815_vm0, %v814_v0  ;;  %625 = vmatpush3.bf16.msra.mxu1 %v670_v37 }
 0x129   :  { %626 = vmatprep.subr.bf16.mxu1 %v814_v0 }
 0x12c   :  { %627 = vmatpush3.bf16.msra.mxu1 %v671_v38 }
 0x12d   :  { %628 = vmatprep.subr.bf16.mxu1 %v814_v0 }
 0x130   :  { %629 = vmatpush3.bf16.msra.mxu1 %v672_v39 }
 0x131   :  { %630 = vmatprep.subr.bf16.mxu1 %v814_v0 }
 0x134   :  { %631 = vmatpush3.bf16.msra.mxu1 %v673_v40 }
 0x135   :  { %632 = vmatprep.subr.bf16.mxu1 %v814_v0 }
 0x138   :  { %633 = vmatpush3.bf16.msra.mxu1 %v674_v41 }
 0x139   :  { %634 = vmatprep.subr.bf16.mxu1 %v814_v0 }
 0x13c   :  { %635 = vmatpush3.bf16.msra.mxu1 %v675_v42 }
 0x13d   :  { %636 = vmatprep.subr.bf16.mxu1 %v814_v0 }
 0x140   :  { %637 = vmatpush3.bf16.msra.mxu1 %v676_v43 }
 0x141   :  { %638 = vmatprep.subr.bf16.mxu1 %v814_v0 }
 0x144   :  { %639 = vmatpush3.bf16.msra.mxu1 %v677_v44 }
 0x1fa   :  { %v247_v27 = vpop.f32.mrb[0].mxu1 }
 0x1fb   :  { %v248_v28 = vadd.f32 %v518_v26, %v247_v27  ;;  %v602_v29 = vpop.f32.mrb[1].mxu1 }
 0x1fc   :  { %v250_v30 = vpop.f32.mrb[2].mxu1 }
 0x1fd   :  { %v527_v31 = vmul.f32 -1.442695, %v248_v28  ;;  %v603_v32 = vpop.f32.mrb[3].mxu1 }
 0x1ff   :  { %678 = vpow2.f32 %v527_v31 }
 0x209   :  { %v679_v33 = vpop.eup %678 }
 0x20a   :  { %v256_v34 = vadd.f32 1.0, %v679_v33 }
 0x20c   :  { %680 = vrcp.f32 %v256_v34 }
 0x216   :  { %v681_v35 = vpop.eup %680 }
 0x217   :  { %v259_v36 = vpack.c.bf16 %v681_v35, %v681_v35 }
 0x219   :  { %621 = vmatmul.mubr.bf16.vlgmr.msra.gmra.mrb[4].mxu0 %v259_v36 }
 0x2ec   :  { %v367_v46 = vpop.f32.mrb[4].mxu0 }
 0x2ed   :  { %v368_v47 = vadd.f32 %v529_v45, %v367_v46  ;;  %v622_v48 = vpop.f32.mrb[5].mxu0 }
 0x2ee   :  { %v370_v49 = vpop.f32.mrb[6].mxu0 }
 0x2ef   :  { %v538_v50 = vmul.f32 -1.442695, %v368_v47  ;;  %v623_v51 = vpop.f32.mrb[7].mxu0 }
 0x2f1   :  { %682 = vpow2.f32 %v538_v50 }
 0x2fb   :  { %v683_v52 = vpop.eup %682 }
 0x2fc   :  { %v376_v53 = vadd.f32 1.0, %v683_v52 }
 0x2fe   :  { %684 = vrcp.f32 %v376_v53 }
 0x308   :  { %v685_v54 = vpop.eup %684 }
 0x309   :  { %v379_v55 = vpack.c.bf16 %v685_v54, %v685_v54 }
 0x30b   :  { %641 = vmatmul.mubr.bf16.vlgmr.msra.gmra.mrb[4].mxu1 %v379_v55 }
 0x3de   :  { %v485_v57 = vpop.f32.mrb[4].mxu1 }
 0x3df   :  { %v486_v58 = vadd.f32 %v539_v56, %v485_v57  ;;  %v642_v59 = vpop.f32.mrb[5].mxu1 }
 0x3e0   :  { %v488_v60 = vpop.f32.mrb[6].mxu1 }
 0x3e1   :  { %v548_v61 = vmul.f32 -1.442695, %v486_v58  ;;  %v643_v62 = vpop.f32.mrb[7].mxu1 }
 0x3e3   :  { %686 = vpow2.f32 %v548_v61 }
 0x3ed   :  { %v687_v63 = vpop.eup %686 }
 0x3ee   :  { %v494_v0 = vadd.f32 1.0, %v687_v63 }
 0x3f0   :  { %688 = vrcp.f32 %v494_v0 }
 0x3fa   :  { %v689_v1 = vpop.eup %688 }
 0x3fb   :  { %497 = vst [vmem:[#allocation10] sm:$0xff] %v689_v1 }
 0x3fc   :  { %789 = shalt.err (!%p786_p8)
}
 0x3fd   :  { %s790_s10 = scalar_lea.hbm %s978_s7, 128 }
 0x3fe   :  { %p791_p9 = scmp.ne.s32.totalorder %s978_s7, %s790_s10  ;;  %p794_p10 = scmp.lt.u32.totalorder %s790_s10, %s978_s7 }
 0x400   :  { %p796_p11 = pnand %p794_p10, %p791_p9 }
 0x402   :  { %799 = shalt.err (!%p796_p11)
}
 0x403   :  { %507 = dma.vmem_to_hbm [thread:$0]  %s505_s30, 128, %s978_s7, [#allocation4]  }
 0x404   :  { %806 = dma.done.wait [#allocation4], 128  }
 0x405   :  { %807 = vsyncadd [#allocation4], 4294967168 }
 0x406   :  { %511 = vsyncpa [#allocation3], 1 }
 0x407   :  { %512 = vsyncpa [#allocation6], 1 }
 0x408   :  { %513 = vsyncpa [#allocation9], 1 }
 0x409   :  { %514 = vsyncpa [#allocation4], 1 }

</bundles_post_ra>
